<compile_context>
chip_gen: v5e
topology: v5e:2x2
jax: 0.10.0
libtpu: 0.0.40
codegen_flags: <defaults>
</compile_context>

<pallas_src>
import functools

import jax
import jax.numpy as jnp
from jax.experimental import pallas as pl
from jax.experimental.pallas import tpu as pltpu


def _round_up(a, b):
    return -(-a // b) * b


def _sublane_multiple(dtype):
    """Sublane tile height for this dtype (8 f32, 16 bf16, 32 int8/fp8)."""
    item = jnp.dtype(dtype).itemsize
    return 8 * max(1, 4 // item)


def _vmem_budgets():
    """(block_pair_budget_bytes, vmem_limit_bytes), generation dependent."""
    try:
        cap = int(pltpu.get_tpu_info().vmem_capacity_bytes)
    except Exception:
        cap = 64 * 1024 * 1024          # conservative default if query fails
    if cap >= 100 * 1024 * 1024:        # v5e / v6e: 128 MiB per core
        return 22 * 1024 * 1024, 96 * 1024 * 1024
    # v7x-class: 64 MiB per TensorCore -- keep the double-buffered pair and
    # compiler temporaries comfortably below it.
    limit = max(16 * 1024 * 1024, (cap * 3) // 4)
    return limit // 3, limit


def _window_geometry(window_size, window_stride, window_dilation, padding, T, L_T):
    """Static (lead, n_valid, trail, start) per window slot.

    Output row t of slot w reads input row  t*stride + w*dilation - padding,
    zero-filled where that row falls outside [0, T).
    """
    geo = []
    for w in range(window_size):
        off = w * window_dilation - padding
        lead = max(0, (-off + window_stride - 1) // window_stride)
        first_invalid = (T - off + window_stride - 1) // window_stride
        first_invalid = max(lead, min(L_T, first_invalid))
        n_valid = first_invalid - lead
        trail = L_T - first_invalid
        start = lead * window_stride + off          # >= 0 by construction
        geo.append((lead, n_valid, trail, start))
    return tuple(geo)


def _read_slot(x_ref, start, n_valid, window_stride):
    """Read the n_valid valid source rows of one window slot from the block."""
    span = (n_valid - 1) * window_stride + 1
    rows = x_ref[:, start:start + span, :]
    if window_stride > 1:
        rows = rows[:, ::window_stride, :]
    return rows


def _unfold_kernel_flat(x_ref, o_ref, *, geometry, window_stride, V):
    """Primary kernel: single lane-dense store of the flattened output block.

    x_ref: (c_blk, T, V)    o_ref: (c_blk, L_T * window_size * V)
    """
    c_blk = x_ref.shape[0]
    dtype = o_ref.dtype
    parts = []
    for (lead, n_valid, trail, start) in geometry:
        segs = []
        if lead > 0:
            segs.append(jnp.zeros((c_blk, lead, V), dtype))
        if n_valid > 0:
            segs.append(_read_slot(x_ref, start, n_valid, window_stride))
        if trail > 0:
            segs.append(jnp.zeros((c_blk, trail, V), dtype))
        parts.append(segs[0] if len(segs) == 1 else jnp.concatenate(segs, axis=1))
    out = parts[0] if len(parts) == 1 else jnp.concatenate(parts, axis=-1)
    # (c_blk, L_T, ws*V) -> (c_blk, L_T*ws*V): lane-dense single store.
    o_ref[...] = out.reshape(c_blk, -1)


def _unfold_kernel_slotwise(x_ref, o_ref, *, geometry, window_stride, V):
    """Fallback kernel: 3-D output block, direct static-view writes per slot.

    x_ref: (c_blk, T, V)    o_ref: (c_blk, L_T, window_size * V)
    """
    c_blk = o_ref.shape[0]
    L_T = o_ref.shape[1]
    dtype = o_ref.dtype
    for w, (lead, n_valid, trail, start) in enumerate(geometry):
        c0, c1 = w * V, (w + 1) * V
        if lead > 0:
            o_ref[:, 0:lead, c0:c1] = jnp.zeros((c_blk, lead, V), dtype)
        if n_valid > 0:
            o_ref[:, lead:lead + n_valid, c0:c1] = _read_slot(
                x_ref, start, n_valid, window_stride)
        if trail > 0:
            o_ref[:, lead + n_valid:L_T, c0:c1] = jnp.zeros((c_blk, trail, V), dtype)


def _choose_c_blk(nc, target, sub):
    """Pick channels per block.  Returns (c_blk, nc_pad)."""
    target = max(1, min(target, nc))
    divs = [d for d in range(1, nc + 1) if nc % d == 0 and d <= target]
    best = max(divs)
    if best == nc or best * 2 >= target:
        # Good divisor.  Only trade block size for an even grid (dual-TC v7x
        # balance) when the grid is short and the shrinkage is mild.
        grid = nc // best
        if 3 <= grid <= 16 and grid % 2 == 1:
            even = [d for d in divs if (nc // d) % 2 == 0 and 4 * d >= 3 * best]
            if even:
                best = max(even)
        return best, 0
    # Awkward factorisation (e.g. prime NC): pad NC up to a multiple of a
    # near-target block instead of collapsing to tiny per-step DMAs.
    c = min(nc, max(sub, (target // sub) * sub))
    return c, (-nc) % c


# Flips to False permanently if the lane-dense flat store fails to lower on
# this jax/Mosaic version; the slot-wise kernel is then used for all calls.
_FLAT_STORE_OK = True


def unfold_temporal_windows(x, window_size, window_stride, window_dilation=1):
    """Pallas TPU implementation of UnfoldTemporalWindows.forward."""
    global _FLAT_STORE_OK

    N, C, T, V = x.shape
    padding = (window_size + (window_size - 1) * (window_dilation - 1) - 1) // 2
    T_pad = T + 2 * padding
    L_T = (T_pad - window_dilation * (window_size - 1) - 1) // window_stride + 1
    W = window_size * V
    geometry = _window_geometry(window_size, window_stride, window_dilation,
                                padding, T, L_T)

    NC = N * C
    x2 = x.reshape(NC, T, V)             # free metadata reshape

    itemsize = jnp.dtype(x.dtype).itemsize
    sub = _sublane_multiple(x.dtype)
    budget, vmem_limit = _vmem_budgets()

    # Conservative per-channel footprint of one in+out block pair, using the
    # lane/sublane-padded 3-D layouts so the same c_blk is safe whichever
    # kernel path ends up running.  The pipeline double-buffers -> 2x this,
    # which still leaves >50% of vmem_limit for compiler temporaries.
    per_ch = (_round_up(T, sub) * _round_up(V, 128)
              + _round_up(L_T, sub) * _round_up(W, 128)) * itemsize
    target = max(1, budget // per_ch)
    c_blk, nc_pad = _choose_c_blk(NC, target, sub)
    if nc_pad:
        x2 = jnp.pad(x2, ((0, nc_pad), (0, 0), (0, 0)))
    NC_eff = NC + nc_pad
    grid = (NC_eff // c_blk,)

    bytes_accessed = (NC_eff * T * V + NC_eff * L_T * W) * itemsize
    cost = pl.CostEstimate(flops=0, transcendentals=0,
                           bytes_accessed=bytes_accessed)
    cparams = pltpu.CompilerParams(
        dimension_semantics=("parallel",),
        vmem_limit_bytes=vmem_limit,
    )
    in_spec = pl.BlockSpec((c_blk, T, V), lambda i: (i, 0, 0))

    out2 = None

    # --- Primary: lane-dense flattened output block, single store. ---------
    flat_shape_ok = (c_blk == NC_eff) or (c_blk % sub == 0)
    if _FLAT_STORE_OK and flat_shape_ok:
        try:
            kernel = functools.partial(_unfold_kernel_flat, geometry=geometry,
                                       window_stride=window_stride, V=V)
            out_flat = pl.pallas_call(
                kernel,
                out_shape=jax.ShapeDtypeStruct((NC_eff, L_T * W), x.dtype),
                grid=grid,
                in_specs=[in_spec],
                out_specs=pl.BlockSpec((c_blk, L_T * W), lambda i: (i, 0)),
                compiler_params=cparams,
                cost_estimate=cost,
            )(x2)
            out_flat = jax.block_until_ready(out_flat)
            out2 = out_flat.reshape(NC_eff, L_T, W)   # free metadata reshape
        except Exception:
            _FLAT_STORE_OK = False
            out2 = None

    # --- Fallback: 3-D output block, direct per-slot static-view writes. ---
    if out2 is None:
        kernel = functools.partial(_unfold_kernel_slotwise, geometry=geometry,
                                   window_stride=window_stride, V=V)
        out2 = pl.pallas_call(
            kernel,
            out_shape=jax.ShapeDtypeStruct((NC_eff, L_T, W), x.dtype),
            grid=grid,
            in_specs=[in_spec],
            out_specs=pl.BlockSpec((c_blk, L_T, W), lambda i: (i, 0, 0)),
            compiler_params=cparams,
            cost_estimate=cost,
        )(x2)

    if nc_pad:
        out2 = out2[:NC]
    return out2.reshape(N, C, L_T, W)


def _reference(x, window_size, window_stride, window_dilation=1):
    """Pure-JAX reference replicating the PyTorch module semantics."""
    N, C, T, V = x.shape
    padding = (window_size + (window_size - 1) * (window_dilation - 1) - 1) // 2
    x_p = jnp.pad(x, ((0, 0), (0, 0), (padding, padding), (0, 0)))
    T_pad = T + 2 * padding
    L_T = (T_pad - window_dilation * (window_size - 1) - 1) // window_stride + 1
    slices = []
    for w in range(window_size):
        start = w * window_dilation
        stop = start + (L_T - 1) * window_stride + 1
        slices.append(x_p[:, :, start:stop:window_stride, :])  # (N,C,L_T,V)
    ref = jnp.stack(slices, axis=3)                 # (N, C, L_T, ws, V)
    return ref.reshape(N, C, L_T, window_size * V)  # (N, C, L_T, ws*V)


if __name__ == "__main__":
    key = jax.random.PRNGKey(0)
    N, C, T, V = 2, 4, 16, 16
    x = jax.random.normal(key, (N, C, T, V), dtype=jnp.float32)

    # Config 1: window_size=3, stride=1, dilation=1
    out1 = unfold_temporal_windows(x, window_size=3, window_stride=1,
                                   window_dilation=1)
    jax.block_until_ready(out1)
    ref1 = _reference(x, 3, 1, 1)
    assert out1.shape == ref1.shape, (out1.shape, ref1.shape)
    assert jnp.allclose(out1, ref1), "mismatch for ws=3, stride=1, dilation=1"

    # Config 2: window_size=3, stride=2, dilation=2 (strided gather plus
    # asymmetric in-kernel zero padding)
    out2 = unfold_temporal_windows(x, window_size=3, window_stride=2,
                                   window_dilation=2)
    jax.block_until_ready(out2)
    ref2 = _reference(x, 3, 2, 2)
    assert out2.shape == ref2.shape, (out2.shape, ref2.shape)
    assert jnp.allclose(out2, ref2), "mismatch for ws=3, stride=2, dilation=2"

    # Config 3: window_size=5, stride=1, dilation=1 (more window slots)
    out3 = unfold_temporal_windows(x, window_size=5, window_stride=1,
                                   window_dilation=1)
    jax.block_until_ready(out3)
    ref3 = _reference(x, 5, 1, 1)
    assert out3.shape == ref3.shape, (out3.shape, ref3.shape)
    assert jnp.allclose(out3, ref3), "mismatch for ws=5, stride=1, dilation=1"

    print("KERNEL_OK")
</pallas_src>

<mosaic_0001>
module attributes {stable_mosaic.version = 11 : i64} {
  func.func @_unfold_kernel_flat(%arg0: i32, %arg1: memref<8x16x16xf32, #tpu.memory_space<vmem>>, %arg2: memref<8x768xf32, #tpu.memory_space<vmem>>) attributes {dimension_semantics = [#tpu.dimension_semantics<parallel>], iteration_bounds = array<i64: 1>, scalar_prefetch = 0 : i64, scratch_operands = 0 : i64, tpu.core_type = #tpu.core_type<tc>, window_params = [{transform_indices = @transform_0, window_bounds = array<i64: 8, 16, 16>}, {transform_indices = @transform_1, window_bounds = array<i64: 8, 768>}]} {
    %cst = arith.constant 0.000000e+00 : f32
    %0 = vector.broadcast %cst : f32 to vector<8x1x16xf32>
    %c0 = arith.constant 0 : index
    %c0_0 = arith.constant 0 : index
    %c0_1 = arith.constant 0 : index
    %1 = vector.load %arg1[%c0, %c0_0, %c0_1] : memref<8x16x16xf32, #tpu.memory_space<vmem>>, vector<8x15x16xf32>
    %2 = tpu.concatenate %0, %1 in 1 : vector<8x1x16xf32>, vector<8x15x16xf32> -> vector<8x16x16xf32>
    %c0_2 = arith.constant 0 : index
    %c0_3 = arith.constant 0 : index
    %c0_4 = arith.constant 0 : index
    %3 = vector.load %arg1[%c0_2, %c0_3, %c0_4] : memref<8x16x16xf32, #tpu.memory_space<vmem>>, vector<8x16x16xf32>
    %c0_5 = arith.constant 0 : index
    %c1 = arith.constant 1 : index
    %c0_6 = arith.constant 0 : index
    %4 = vector.load %arg1[%c0_5, %c1, %c0_6] : memref<8x16x16xf32, #tpu.memory_space<vmem>>, vector<8x15x16xf32>
    %cst_7 = arith.constant 0.000000e+00 : f32
    %5 = vector.broadcast %cst_7 : f32 to vector<8x1x16xf32>
    %6 = tpu.concatenate %4, %5 in 1 : vector<8x15x16xf32>, vector<8x1x16xf32> -> vector<8x16x16xf32>
    %7 = tpu.concatenate %2, %3, %6 in 2 : vector<8x16x16xf32>, vector<8x16x16xf32>, vector<8x16x16xf32> -> vector<8x16x48xf32>
    %8 = vector.shape_cast %7 : vector<8x16x48xf32> to vector<8x768xf32>
    %c0_8 = arith.constant 0 : index
    %c0_9 = arith.constant 0 : index
    %9 = vector.load %arg2[%c0_8, %c0_9] : memref<8x768xf32, #tpu.memory_space<vmem>>, vector<8x768xf32>
    tpu.vector_store %arg2[%c0_8, %c0_9], %8 {strides = array<i32>} : memref<8x768xf32, #tpu.memory_space<vmem>>, vector<8x768xf32>,
    return
  }
  func.func @transform_0(%arg0: i32) -> (i32, i32, i32) {
    %c0_i32 = arith.constant 0 : i32
    %c0_i32_0 = arith.constant 0 : i32
    %c0_i32_1 = arith.constant 0 : i32
    return %arg0, %c0_i32, %c0_i32_0 : i32, i32, i32
  }
  func.func @transform_1(%arg0: i32) -> (i32, i32) {
    %c0_i32 = arith.constant 0 : i32
    %c0_i32_0 = arith.constant 0 : i32
    return %arg0, %c0_i32 : i32, i32
  }
}

module attributes {stable_mosaic.version = 11 : i64} {
  func.func @_unfold_kernel_slotwise(%arg0: i32, %arg1: memref<8x16x16xf32, #tpu.memory_space<vmem>>, %arg2: memref<8x16x48xf32, #tpu.memory_space<vmem>>) attributes {dimension_semantics = [#tpu.dimension_semantics<parallel>], iteration_bounds = array<i64: 1>, scalar_prefetch = 0 : i64, scratch_operands = 0 : i64, tpu.core_type = #tpu.core_type<tc>, window_params = [{transform_indices = @transform_0, window_bounds = array<i64: 8, 16, 16>}, {transform_indices = @transform_1, window_bounds = array<i64: 8, 16, 48>}]} {
    %cst = arith.constant 0.000000e+00 : f32
    %0 = vector.broadcast %cst : f32 to vector<8x1x16xf32>
    %c0 = arith.constant 0 : index
    %c0_0 = arith.constant 0 : index
    %c0_1 = arith.constant 0 : index
    %1 = vector.load %arg2[%c0, %c0_0, %c0_1] : memref<8x16x48xf32, #tpu.memory_space<vmem>>, vector<8x1x16xf32>
    tpu.vector_store %arg2[%c0, %c0_0, %c0_1], %0 {strides = array<i32>} : memref<8x16x48xf32, #tpu.memory_space<vmem>>, vector<8x1x16xf32>,
    %c0_2 = arith.constant 0 : index
    %c0_3 = arith.constant 0 : index
    %c0_4 = arith.constant 0 : index
    %2 = vector.load %arg1[%c0_2, %c0_3, %c0_4] : memref<8x16x16xf32, #tpu.memory_space<vmem>>, vector<8x15x16xf32>
    %c0_5 = arith.constant 0 : index
    %c1 = arith.constant 1 : index
    %c0_6 = arith.constant 0 : index
    %3 = vector.load %arg2[%c0_5, %c1, %c0_6] : memref<8x16x48xf32, #tpu.memory_space<vmem>>, vector<8x15x16xf32>
    tpu.vector_store %arg2[%c0_5, %c1, %c0_6], %2 {strides = array<i32>} : memref<8x16x48xf32, #tpu.memory_space<vmem>>, vector<8x15x16xf32>,
    %c0_7 = arith.constant 0 : index
    %c0_8 = arith.constant 0 : index
    %c0_9 = arith.constant 0 : index
    %4 = vector.load %arg1[%c0_7, %c0_8, %c0_9] : memref<8x16x16xf32, #tpu.memory_space<vmem>>, vector<8x16x16xf32>
    %c0_10 = arith.constant 0 : index
    %c0_11 = arith.constant 0 : index
    %c16 = arith.constant 16 : index
    %5 = vector.load %arg2[%c0_10, %c0_11, %c16] : memref<8x16x48xf32, #tpu.memory_space<vmem>>, vector<8x16x16xf32>
    tpu.vector_store %arg2[%c0_10, %c0_11, %c16], %4 {strides = array<i32>} : memref<8x16x48xf32, #tpu.memory_space<vmem>>, vector<8x16x16xf32>,
    %c0_12 = arith.constant 0 : index
    %c1_13 = arith.constant 1 : index
    %c0_14 = arith.constant 0 : index
    %6 = vector.load %arg1[%c0_12, %c1_13, %c0_14] : memref<8x16x16xf32, #tpu.memory_space<vmem>>, vector<8x15x16xf32>
    %c0_15 = arith.constant 0 : index
    %c0_16 = arith.constant 0 : index
    %c32 = arith.constant 32 : index
    %7 = vector.load %arg2[%c0_15, %c0_16, %c32] : memref<8x16x48xf32, #tpu.memory_space<vmem>>, vector<8x15x16xf32>
    tpu.vector_store %arg2[%c0_15, %c0_16, %c32], %6 {strides = array<i32>} : memref<8x16x48xf32, #tpu.memory_space<vmem>>, vector<8x15x16xf32>,
    %cst_17 = arith.constant 0.000000e+00 : f32
    %8 = vector.broadcast %cst_17 : f32 to vector<8x1x16xf32>
    %c0_18 = arith.constant 0 : index
    %c15 = arith.constant 15 : index
    %c32_19 = arith.constant 32 : index
    %9 = vector.load %arg2[%c0_18, %c15, %c32_19] : memref<8x16x48xf32, #tpu.memory_space<vmem>>, vector<8x1x16xf32>
    tpu.vector_store %arg2[%c0_18, %c15, %c32_19], %8 {strides = array<i32>} : memref<8x16x48xf32, #tpu.memory_space<vmem>>, vector<8x1x16xf32>,
    return
  }
  func.func @transform_0(%arg0: i32) -> (i32, i32, i32) {
    %c0_i32 = arith.constant 0 : i32
    %c0_i32_0 = arith.constant 0 : i32
    %c0_i32_1 = arith.constant 0 : i32
    return %arg0, %c0_i32, %c0_i32_0 : i32, i32, i32
  }
  func.func @transform_1(%arg0: i32) -> (i32, i32, i32) {
    %c0_i32 = arith.constant 0 : i32
    %c0_i32_0 = arith.constant 0 : i32
    %c0_i32_1 = arith.constant 0 : i32
    return %arg0, %c0_i32, %c0_i32_0 : i32, i32, i32
  }
}

</mosaic_0001>

<bundles_post_ra>
// kernel: tpu_custom_call.1
= control target key start
LH: loop header
LB: loop body
LE: loop exit
PB: predicated region body
PF: predicated region fallthrough
CT: control target
= control target key end

     0   :  { %6 = vsyncpa [#allocation3], 0  ;;  %s1003_s0 = inlined_call_operand.hbm [shape: f32[8,16,16], index: 0, kind: input, shape index: {}]   ;;  %s1004_s1 = inlined_call_operand.hbm [shape: f32[8,768], index: 1, kind: output, shape index: {}]  }
   0x1   :  { %7 = vsyncpa [#allocation4], 0  ;;  %s12_s8 = sshll.u32 %s1003_s0, 4  ;;  %s681_s9 = smov [#allocation2]   ;;  %s13_s8 = int_to_ptr.hbm [resolvable:$true] %s12_s8 }
   0x2   :  { %s14_s10 = sshll.u32 %s681_s9, 4  ;;  %s682_s11 = smov 128   ;;  %s15_s10 = int_to_ptr.vmem [resolvable:$true] %s14_s10 }
   0x3   :  { %s683_s12 = smov 8  }
   0x4   :  { %20 = dma.hbm_to_vmem [thread:$0]  %s13_s8, 2048, %s15_s10, [#allocation3], %s682_s11, %s682_s11, %s683_s12  }
   0x5   :  { %677 = dma.done.wait [#allocation3], 2048  }
   0x6   :  { %678 = vsyncadd [#allocation3], 4294965248  ;;  %v707_v0 = vld [vmem:[#allocation2 + $0x20] sm:$0xff]  ;;  %v709_v1 = vld [vmem:[#allocation2 + $0x10] sm:$0xff]  ;;  %s684_s13 = smov 16   ;;  %s685_s0 = smov 32  }
   0x7   :  { %v711_v2 = vld [vmem:[#allocation2] sm:$0xff]  ;;  %155 = vrot.lane.b32.xlu2 %v707_v0, %s684_s13  ;;  %151 = vrot.lane.b32.xlu1 %v709_v1, %s684_s13  ;;  %v108_v3 = vld [vmem:[#allocation2 + $0x28] sm:$0xff]  ;;  %v107_v4 = vld [vmem:[#allocation2 + $0x18] sm:$0xff]  ;;  %vm130_vm0 = vcmask 1046528   ;;  %v64_v40 = vrot.slane %v707_v0, 7  ;;  %vm57_vm1 = vcmask 1040384  }
   0x8   :  { %147 = vrot.lane.b32.xlu0 %v711_v2, %s684_s13  ;;  %v106_v5 = vld [vmem:[#allocation2 + $0x8] sm:$0xff]  ;;  %v722_v6 = vld [vmem:[#allocation2 + $0x40] sm:$0xff]  ;;  %v109_v7 = vld [vmem:[#allocation2 + $0x38] sm:$0xff]  ;;  %vm259_vm2 = vcmask 130048   ;;  %v61_v46 = vrot.slane %v709_v1, 7  ;;  %v58_v47 = vrot.slane %v711_v2, 7 }
   0x9   :  { %v724_v8 = vld [vmem:[#allocation2 + $0x30] sm:$0xff]  ;;  %v111_v9 = vld [vmem:[#allocation2 + $0x58] sm:$0xff]  ;;  %v110_v11 = vld [vmem:[#allocation2 + $0x48] sm:$0xff]  ;;  %v100_v41 = vsel %vm57_vm1, 0.0, %v64_v40  ;;  %vm276_vm3 = vcmask 261120   ;;  %vm294_vm4 = vcmask 1047556  }
   0xa   :  { %v731_v10 = vld [vmem:[#allocation2 + $0x50] sm:$0xff]  ;;  %v118_v12 = vld [vmem:[#allocation2 + $0x21] sm:$0xff]  ;;  %v127_v15 = vld [vmem:[#allocation2 + $0x69] sm:$0x7f]  ;;  %v99_v48 = vsel %vm57_vm1, 0.0, %v61_v46  ;;  %v98_v49 = vsel %vm57_vm1, 0.0, %v58_v47 }
   0xb   :  { %v112_v13 = vld [vmem:[#allocation2 + $0x68] sm:$0xff]  ;;  %v737_v14 = vld [vmem:[#allocation2 + $0x60] sm:$0xff]  ;;  %v137_v17 = vsel %vm130_vm0, %v127_v15, 0.0  ;;  %v116_v20 = vld [vmem:[#allocation2 + $0x11] sm:$0xff]  ;;  %s688_s14 = smov 96   ;;  %s689_s15 = smov 48  }
   0xc   :  { %v119_v16 = vld [vmem:[#allocation2 + $0x29] sm:$0x7f]  ;;  %v126_v18 = vld [vmem:[#allocation2 + $0x61] sm:$0xff]  ;;  %v113_v21 = vld [vmem:[#allocation2 + $0x78] sm:$0xff]  ;;  %s690_s16 = smov 64   ;;  %s691_s17 = smov 112  }
   0xd   :  { %v133_v19 = vsel %vm130_vm0, %v119_v16, 0.0  ;;  %v748_v22 = vld [vmem:[#allocation2 + $0x70] sm:$0xff]  ;;  %v121_v23 = vld [vmem:[#allocation2 + $0x39] sm:$0x7f]  ;;  %v123_v28 = vld [vmem:[#allocation2 + $0x49] sm:$0x7f] }
   0xe   :  { %v117_v24 = vld [vmem:[#allocation2 + $0x19] sm:$0x7f]  ;;  %v134_v25 = vsel %vm130_vm0, %v121_v23, 0.0  ;;  %v120_v26 = vld [vmem:[#allocation2 + $0x31] sm:$0xff]  ;;  %v135_v30 = vsel %vm130_vm0, %v123_v28, 0.0  ;;  %v122_v31 = vld [vmem:[#allocation2 + $0x41] sm:$0xff] }
   0xf   :  { %157 = vrot.lane.b32.xlu2 %v108_v3, %s684_s13  ;;  %153 = vrot.lane.b32.xlu1 %v107_v4, %s684_s13  ;;  %v132_v27 = vsel %vm130_vm0, %v117_v24, 0.0  ;;  %v124_v29 = vld [vmem:[#allocation2 + $0x51] sm:$0xff]  ;;  %v115_v32 = vld [vmem:[#allocation2 + $0x9] sm:$0x7f]  ;;  %v125_v33 = vld [vmem:[#allocation2 + $0x59] sm:$0x7f] }
  0x10   :  { %149 = vrot.lane.b32.xlu0 %v106_v5, %s684_s13  ;;  %v131_v34 = vsel %vm130_vm0, %v115_v32, 0.0  ;;  %v114_v35 = vld [vmem:[#allocation2 + $0x1] sm:$0xff]  ;;  %v136_v36 = vsel %vm130_vm0, %v125_v33, 0.0  ;;  %v129_v37 = vld [vmem:[#allocation2 + $0x79] sm:$0x7f]  ;;  %v128_v39 = vld [vmem:[#allocation2 + $0x71] sm:$0xff] }
  0x11   :  { %v138_v38 = vsel %vm130_vm0, %v129_v37, 0.0  ;;  %v28_v50 = vld [vmem:[#allocation2 + $0x18] sm:$0x7f]  ;;  %v26_v53 = vld [vmem:[#allocation2 + $0x8] sm:$0x7f]  ;;  %v67_v4 = vrot.slane %v724_v8, 7 }
  0x12   :  { %v62_v57 = vrot.slane %v28_v50, 7  ;;  %v59_v58 = vrot.slane %v26_v53, 7  ;;  %v32_v61 = vld [vmem:[#allocation2 + $0x38] sm:$0x7f]  ;;  %v38_v28 = vld [vmem:[#allocation2 + $0x68] sm:$0x7f] }
  0x13   :  { %v68_v3 = vrot.slane %v32_v61, 7  ;;  %v73_v50 = vrot.slane %v731_v10, 7  ;;  %s692_s18 = smov 80   ;;  %vm574_vm5 = vcmask 392192   ;;  %vm576_vm6 = vcmask 785408   ;;  %s693_s19 = smov [#allocation5]  }
  0x14   :  { %v63_v59 = vsel %vm57_vm1, %v61_v46, %v62_v57  ;;  %v60_v60 = vsel %vm57_vm1, %v58_v47, %v59_v58  ;;  %v70_v47 = vrot.slane %v722_v6, 7  ;;  %vm581_vm7 = vcmask 916480   ;;  %s604_s20 = sshll.u32 %s693_s19, 4  ;;  %s606_s23 = sshll.u32 %s1004_s1, 4  ;;  %s605_s20 = int_to_ptr.vmem [resolvable:$true] %s604_s20  ;;  %s607_s23 = int_to_ptr.hbm [resolvable:$true] %s606_s23 }
  0x15   :  { %v69_v5 = vsel %vm57_vm1, %v67_v4, %v68_v3  ;;  %vm579_vm8 = vcmask 523264   ;;  %vm584_vm9 = vcmask 654336  }
  0x17   :  { %163 = vrot.lane.b32.xlu2 %v722_v6, %s684_s13  ;;  %161 = vrot.lane.b32.xlu1 %v109_v7, %s684_s13 }
  0x18   :  { %159 = vrot.lane.b32.xlu0 %v724_v8, %s684_s13 }
  0x1f   :  { %169 = vrot.lane.b32.xlu2 %v111_v9, %s684_s13  ;;  %167 = vrot.lane.b32.xlu1 %v731_v10, %s684_s13 }
  0x20   :  { %165 = vrot.lane.b32.xlu0 %v110_v11, %s684_s13 }
  0x27   :  { %219 = vrot.lane.b32.xlu2 %v118_v12, %s685_s0  ;;  %173 = vrot.lane.b32.xlu1 %v112_v13, %s684_s13 }
  0x28   :  { %171 = vrot.lane.b32.xlu0 %v737_v14, %s684_s13 }
  0x2f   :  { %237 = vrot.lane.b32.xlu2 %v137_v17, %s685_s0  ;;  %235 = vrot.lane.b32.xlu1 %v126_v18, %s685_s0 }
  0x30   :  { %221 = vrot.lane.b32.xlu0 %v133_v19, %s685_s0 }
  0x37   :  { %215 = vrot.lane.b32.xlu2 %v116_v20, %s685_s0  ;;  %177 = vrot.lane.b32.xlu1 %v113_v21, %s684_s13  ;;  %v30_v20 = vld [vmem:[#allocation2 + $0x28] sm:$0x7f] }
  0x38   :  { %175 = vrot.lane.b32.xlu0 %v748_v22, %s684_s13  ;;  %v65_v21 = vrot.slane %v30_v20, 7 }
  0x3a   :  { %v66_v24 = vsel %vm57_vm1, %v64_v40, %v65_v21  ;;  %v34_v40 = vld [vmem:[#allocation2 + $0x48] sm:$0x7f] }
  0x3f   :  { %225 = vrot.lane.b32.xlu2 %v134_v25, %s685_s0  ;;  %223 = vrot.lane.b32.xlu1 %v120_v26, %s685_s0 }
  0x40   :  { %217 = vrot.lane.b32.xlu0 %v132_v27, %s685_s0 }
  0x47   :  { %231 = vrot.lane.b32.xlu2 %v124_v29, %s685_s0  ;;  %229 = vrot.lane.b32.xlu1 %v135_v30, %s685_s0  ;;  %v686_v30 = vmov 1983009808  }
  0x48   :  { %227 = vrot.lane.b32.xlu0 %v122_v31, %s685_s0  ;;  %v299_v31 = vunpack.c.l.s4 %v686_v30  ;;  %v687_v30 = vmov 1934713408  }
  0x4f   :  { %213 = vrot.lane.b32.xlu2 %v131_v34, %s685_s0  ;;  %211 = vrot.lane.b32.xlu1 %v114_v35, %s685_s0 }
  0x50   :  { %233 = vrot.lane.b32.xlu0 %v136_v36, %s685_s0  ;;  %v77_v36 = vrot.slane %v38_v28, 7 }
  0x57   :  { %241 = vrot.lane.b32.xlu1 %v138_v38, %s685_s0 }
  0x58   :  { %239 = vrot.lane.b32.xlu0 %v128_v39, %s685_s0  ;;  %v76_v39 = vrot.slane %v737_v14, 7  ;;  %v102_v14 = vsel %vm57_vm1, 0.0, %v70_v47 }
  0x5a   :  { %v104_v6 = vsel %vm57_vm1, 0.0, %v76_v39 }
  0x61   :  { %v156_v42 = vpop.permute.xlu2 %155 }
  0x62   :  { %v774_v43 = vsel %vm259_vm2, %v100_v41, %v156_v42  ;;  %v815_v41 = vunpack.c.0.s8 %v299_v31 }
  0x69   :  { %v158_v44 = vpop.permute.xlu2 %157 }
  0x6a   :  { %v265_v26 = vsel %vm259_vm2, %v66_v24, %v158_v44  ;;  %v101_v44 = vsel %vm57_vm1, 0.0, %v67_v4 }
  0x71   :  { %v776_v45 = vpop.permute.xlu2 %163 }
  0x72   :  { %v268_v28 = vsel %vm259_vm2, %v102_v14, %v776_v45 }
  0x79   :  { %v782_v51 = vpop.permute.xlu2 %169  ;;  %v152_v52 = vpop.permute.xlu1 %151 }
  0x7a   :  { %v262_v54 = vsel %vm259_vm2, %v99_v48, %v152_v52  ;;  %v148_v55 = vpop.permute.xlu0 %147  ;;  %v71_v52 = vrot.slane %v34_v40, 7 }
  0x7b   :  { %v786_v56 = vsel %vm259_vm2, %v98_v49, %v148_v55  ;;  %v78_v49 = vsel %vm57_vm1, %v76_v39, %v77_v36 }
  0x7c   :  { %v72_v3 = vsel %vm57_vm1, %v70_v47, %v71_v52 }
  0x81   :  { %v790_v62 = vpop.permute.xlu2 %219  ;;  %v154_v63 = vpop.permute.xlu1 %153 }
  0x82   :  { %v263_v0 = vsel %vm259_vm2, %v63_v59, %v154_v63  ;;  %v150_v1 = vpop.permute.xlu0 %149  ;;  %v281_v14 = vsel %vm276_vm3, %v774_v43, %v790_v62 }
  0x83   :  { %v261_v2 = vsel %vm259_vm2, %v60_v60, %v150_v1 }
  0x89   :  { %v796_v7 = vpop.permute.xlu2 %237  ;;  %v162_v9 = vpop.permute.xlu1 %161 }
  0x8a   :  { %v267_v11 = vsel %vm259_vm2, %v69_v5, %v162_v9  ;;  %v160_v12 = vpop.permute.xlu0 %159  ;;  %v36_v9 = vld [vmem:[#allocation2 + $0x58] sm:$0x7f] }
  0x8b   :  { %v266_v53 = vsel %vm259_vm2, %v101_v44, %v160_v12 }
  0x91   :  { %v216_v13 = vpop.permute.xlu2 %215  ;;  %v799_v15 = vpop.permute.xlu1 %167 }
  0x92   :  { %v801_v16 = vpop.permute.xlu0 %165  ;;  %v279_v46 = vsel %vm276_vm3, %v262_v54, %v216_v13 }
  0x93   :  { %v308_v55 = vrot.slane %v279_v46, 4 }
  0x99   :  { %v226_v17 = vpop.permute.xlu2 %225  ;;  %v174_v18 = vpop.permute.xlu1 %173 }
  0x9a   :  { %v172_v19 = vpop.permute.xlu0 %171  ;;  %v284_v48 = vsel %vm276_vm3, %v267_v11, %v226_v17  ;;  %v273_v54 = vsel %vm259_vm2, %v78_v49, %v174_v18  ;;  %v79_v18 = vrot.slane %v748_v22, 7  ;;  %v269_v22 = vsel %vm259_vm2, %v72_v3, %v801_v16 }
  0x9b   :  { %v418_v59 = vrot.slane %v284_v48, 4  ;;  %v272_v11 = vsel %vm259_vm2, %v104_v6, %v172_v19  ;;  %v290_v20 = vsel %vm276_vm3, %v273_v54, %v796_v7  ;;  %v347_v7 = vunpack.c.l.s4 %v687_v30 }
  0x9c   :  { %v430_v31 = vrot.slane %v290_v20, 4 }
  0x9d   :  { %v857_v49 = vunpack.c.0.s8 %v347_v7 }
  0xa1   :  { %v803_v23 = vpop.permute.xlu2 %231  ;;  %v236_v8 = vpop.permute.xlu1 %235 }
  0xa2   :  { %v222_v25 = vpop.permute.xlu0 %221 }
  0xa3   :  { %v282_v27 = vsel %vm276_vm3, %v265_v26, %v222_v25  ;;  %v40_v25 = vld [vmem:[#allocation2 + $0x78] sm:$0x7f] }
  0xa4   :  { %v406_v29 = vrot.slane %v282_v27, 4  ;;  %v80_v39 = vrot.slane %v40_v25, 7 }
  0xa9   :  { %v214_v32 = vpop.permute.xlu2 %213  ;;  %v808_v33 = vpop.permute.xlu1 %177 }
  0xaa   :  { %v278_v34 = vsel %vm276_vm3, %v261_v2, %v214_v32  ;;  %v811_v35 = vpop.permute.xlu0 %175 }
  0xab   :  { %v407_v37 = vsel %vm294_vm4, %v406_v29, %v278_v34  ;;  %v408_v38 = vrot.slane %v278_v34, 4  ;;  %v74_v29 = vrot.slane %v36_v9, 7 }
  0xac   :  { %v413_v57 = vperm.slane %v407_v37, %v815_v41  ;;  %v103_v37 = vsel %vm57_vm1, 0.0, %v73_v50 }
  0xad   :  { %v409_v42 = vsel %vm294_vm4, %v282_v27, %v408_v38  ;;  %v75_v52 = vsel %vm57_vm1, %v73_v50, %v74_v29  ;;  %v105_v50 = vsel %vm57_vm1, 0.0, %v79_v18 }
  0xae   :  { %v417_v63 = vperm.slane %v409_v42, %v815_v41  ;;  %v456_v12 = vrot.slane %v413_v57, 4  ;;  %v271_v62 = vsel %vm259_vm2, %v75_v52, %v782_v51 }
  0xb0   :  { %v468_v24 = vrot.slane %v417_v63, 4 }
  0xb1   :  { %v224_v58 = vpop.permute.xlu1 %223 }
  0xb2   :  { %v283_v60 = vsel %vm276_vm3, %v266_v53, %v224_v58  ;;  %v218_v61 = vpop.permute.xlu0 %217  ;;  %v270_v53 = vsel %vm259_vm2, %v103_v37, %v799_v15  ;;  %v81_v58 = vsel %vm57_vm1, %v79_v18, %v80_v39  ;;  %v293_v15 = vrot.slane %v281_v14, 4 }
  0xb3   :  { %v306_v10 = vrot.slane %v283_v60, 4  ;;  %v309_v1 = vsel %vm294_vm4, %v283_v60, %v308_v55  ;;  %v280_v2 = vsel %vm276_vm3, %v263_v0, %v218_v61  ;;  %v289_v0 = vsel %vm276_vm3, %v272_v11, %v236_v8 }
  0xb4   :  { %v419_v4 = vsel %vm294_vm4, %v418_v59, %v280_v2  ;;  %v420_v5 = vrot.slane %v280_v2, 4  ;;  %v318_v38 = vrot.slane %v289_v0, 4  ;;  %v317_v59 = vperm.slane %v309_v1, %v815_v41 }
  0xb5   :  { %v307_v13 = vsel %vm294_vm4, %v306_v10, %v279_v46  ;;  %v425_v17 = vperm.slane %v419_v4, %v815_v41  ;;  %v275_v60 = vsel %vm259_vm2, %v81_v58, %v808_v33 }
  0xb6   :  { %v421_v21 = vsel %vm294_vm4, %v284_v48, %v420_v5  ;;  %v313_v6 = vperm.slane %v307_v13, %v815_v41  ;;  %v354_v10 = vrot.slane %v317_v59, 4 }
  0xb7   :  { %v429_v26 = vperm.slane %v421_v21, %v815_v41  ;;  %v454_v27 = vrot.slane %v425_v17, 4  ;;  %v457_v19 = vsel %vm294_vm4, %v425_v17, %v456_v12 }
  0xb8   :  { %v876_v43 = vperm.slane %v457_v19, %v857_v49  ;;  %v342_v9 = vrot.slane %v313_v6, 4 }
  0xb9   :  { %v466_v8 = vrot.slane %v429_v26, 4  ;;  %v230_v32 = vpop.permute.xlu1 %229  ;;  %v455_v34 = vsel %vm294_vm4, %v454_v27, %v413_v57  ;;  %v469_v36 = vsel %vm294_vm4, %v429_v26, %v468_v24  ;;  %v868_v57 = vsel %vm276_vm3, %v270_v53, %v803_v23 }
  0xba   :  { %v286_v40 = vsel %vm276_vm3, %v269_v22, %v230_v32  ;;  %v228_v45 = vpop.permute.xlu0 %227  ;;  %v332_v23 = vrot.slane %v868_v57, 4  ;;  %v888_v3 = vperm.slane %v455_v34, %v857_v49  ;;  %v895_v33 = vperm.slane %v469_v36, %v857_v49 }
  0xbb   :  { %v431_v42 = vsel %vm294_vm4, %v430_v31, %v286_v40  ;;  %v432_v44 = vrot.slane %v286_v40, 4  ;;  %v285_v16 = vsel %vm276_vm3, %v268_v28, %v228_v45  ;;  %v467_v46 = vsel %vm294_vm4, %v466_v8, %v417_v63 }
  0xbc   :  { %v319_v47 = vsel %vm294_vm4, %v318_v38, %v285_v16  ;;  %v320_v48 = vrot.slane %v285_v16, 4  ;;  %v274_v63 = vsel %vm259_vm2, %v105_v50, %v811_v35  ;;  %v891_v51 = vperm.slane %v431_v42, %v815_v41 }
  0xbd   :  { %v433_v55 = vsel %vm294_vm4, %v290_v20, %v432_v44  ;;  %v898_v35 = vperm.slane %v319_v47, %v815_v41  ;;  %v906_v18 = vperm.slane %v467_v46, %v857_v49  ;;  %v504_v27 = vrot.slane %v888_v3, 4 }
  0xbe   :  { %v321_v54 = vsel %vm294_vm4, %v289_v0, %v320_v48  ;;  %v441_v12 = vperm.slane %v433_v55, %v815_v41  ;;  %v480_v25 = vrot.slane %v891_v51, 4  ;;  %v516_v19 = vrot.slane %v895_v33, 4 }
  0xbf   :  { %v329_v13 = vperm.slane %v321_v54, %v815_v41  ;;  %v368_v28 = vrot.slane %v898_v35, 4  ;;  %v512_v34 = vrot.slane %v906_v18, 4 }
  0xc0   :  { %v492_v36 = vrot.slane %v441_v12, 4 }
  0xc1   :  { %v212_v61 = vpop.permute.xlu1 %211  ;;  %v380_v37 = vrot.slane %v329_v13, 4 }
  0xc2   :  { %v277_v1 = vsel %vm276_vm3, %v786_v56, %v212_v61  ;;  %v234_v2 = vpop.permute.xlu0 %233  ;;  %v508_v56 = vrot.slane %v876_v43, 4 }
  0xc3   :  { %v295_v4 = vsel %vm294_vm4, %v293_v15, %v277_v1  ;;  %v296_v5 = vrot.slane %v277_v1, 4  ;;  %v288_v21 = vsel %vm276_vm3, %v271_v62, %v234_v2 }
  0xc4   :  { %v301_v11 = vperm.slane %v295_v4, %v815_v41  ;;  %v444_v7 = vrot.slane %v288_v21, 4 }
  0xc5   :  { %v297_v17 = vsel %vm294_vm4, %v281_v14, %v296_v5 }
  0xc6   :  { %v305_v20 = vperm.slane %v297_v17, %v815_v41  ;;  %v344_v0 = vrot.slane %v301_v11, 4  ;;  %v343_v24 = vsel %vm294_vm4, %v342_v9, %v301_v11 }
  0xc7   :  { %v913_v26 = vperm.slane %v343_v24, %v857_v49 }
  0xc8   :  { %v356_v29 = vrot.slane %v305_v20, 4  ;;  %v345_v22 = vsel %vm294_vm4, %v313_v6, %v344_v0  ;;  %v355_v30 = vsel %vm294_vm4, %v354_v10, %v305_v20 }
  0xc9   :  { %v242_v31 = vpop.permute.xlu1 %241  ;;  %v353_v8 = vperm.slane %v345_v22, %v857_v49  ;;  %v361_v32 = vperm.slane %v355_v30, %v857_v49  ;;  %v392_v16 = vrot.slane %v913_v26, 4 }
  0xca   :  { %v292_v38 = vsel %vm276_vm3, %v275_v60, %v242_v31  ;;  %v240_v39 = vpop.permute.xlu0 %239  ;;  %v357_v40 = vsel %vm294_vm4, %v317_v59, %v356_v29 }
  0xcb   :  { %v442_v45 = vrot.slane %v292_v38, 4  ;;  %v445_v42 = vsel %vm294_vm4, %v292_v38, %v444_v7  ;;  %v291_v44 = vsel %vm276_vm3, %v274_v63, %v240_v39  ;;  %v396_v52 = vrot.slane %v353_v8, 4 }
  0xcc   :  { %v453_v46 = vperm.slane %v445_v42, %v815_v41  ;;  %v330_v47 = vrot.slane %v291_v44, 4  ;;  %v333_v48 = vsel %vm294_vm4, %v291_v44, %v332_v23  ;;  %v365_v55 = vperm.slane %v357_v40, %v857_v49 }
  0xcd   :  { %v443_v14 = vsel %vm294_vm4, %v442_v45, %v288_v21  ;;  %v341_v53 = vperm.slane %v333_v48, %v815_v41  ;;  %v400_v58 = vrot.slane %v361_v32, 4 }
  0xce   :  { %v449_v59 = vperm.slane %v443_v14, %v815_v41  ;;  %v490_v54 = vrot.slane %v453_v46, 4  ;;  %v331_v50 = vsel %vm294_vm4, %v330_v47, %v868_v57  ;;  %v493_v6 = vsel %vm294_vm4, %v453_v46, %v492_v36 }
  0xcf   :  { %v337_v62 = vperm.slane %v331_v50, %v815_v41  ;;  %v378_v15 = vrot.slane %v341_v53, 4  ;;  %v381_v23 = vsel %vm294_vm4, %v341_v53, %v380_v37  ;;  %v501_v60 = vperm.slane %v493_v6, %v857_v49 }
  0xd0   :  { %v478_v61 = vrot.slane %v449_v59, 4  ;;  %v481_v63 = vsel %vm294_vm4, %v449_v59, %v480_v25  ;;  %v389_v10 = vperm.slane %v381_v23, %v857_v49  ;;  %v491_v1 = vsel %vm294_vm4, %v490_v54, %v441_v12 }
  0xd1   :  { %v366_v2 = vrot.slane %v337_v62, 4  ;;  %v369_v4 = vsel %vm294_vm4, %v337_v62, %v368_v28  ;;  %v489_v57 = vperm.slane %v481_v63, %v857_v49  ;;  %v379_v5 = vsel %vm294_vm4, %v378_v15, %v329_v13 }
  0xd2   :  { %v377_v41 = vperm.slane %v369_v4, %v857_v49  ;;  %v385_v9 = vperm.slane %v379_v5, %v857_v49  ;;  %v402_v11 = vrot.slane %v389_v10, 4  ;;  %v479_v17 = vsel %vm294_vm4, %v478_v61, %v891_v51 }
  0xd3   :  { %v506_v20 = vrot.slane %v489_v57, 4  ;;  %v367_v0 = vsel %vm294_vm4, %v366_v2, %v898_v35  ;;  %v509_v12 = vsel %vm294_vm4, %v489_v57, %v508_v56  ;;  %v485_v21 = vperm.slane %v479_v17, %v857_v49 }
  0xd4   :  { %v397_v24 = vsel %vm294_vm4, %v377_v41, %v396_v52  ;;  %v394_v25 = vrot.slane %v377_v41, 4  ;;  %v373_v13 = vperm.slane %v367_v0, %v857_v49  ;;  %v398_v28 = vrot.slane %v385_v9, 4 }
  0xd5   :  { %527 = vrot.lane.b32.xlu0 %v397_v24, %s684_s13  ;;  %v507_v29 = vsel %vm294_vm4, %v506_v20, %v876_v43  ;;  %v403_v51 = vsel %vm294_vm4, %v402_v11, %v365_v55  ;;  %v401_v22 = vsel %vm294_vm4, %v385_v9, %v400_v58  ;;  %v502_v35 = vrot.slane %v485_v21, 4 }
  0xd6   :  { %v395_v56 = vsel %vm294_vm4, %v394_v25, %v353_v8  ;;  %551 = vrot.lane.b32.xlu1 %v507_v29, %s688_s14  ;;  %v390_v30 = vrot.slane %v373_v13, 4  ;;  %v393_v7 = vsel %vm294_vm4, %v373_v13, %v392_v16  ;;  %v399_v31 = vsel %vm294_vm4, %v398_v28, %v361_v32 }
  0xd7   :  { %523 = vrot.lane.b32.xlu2 %v395_v56, %s688_s14  ;;  %v505_v36 = vsel %vm294_vm4, %v485_v21, %v504_v27  ;;  %v497_v43 = vperm.slane %v491_v1, %v857_v49  ;;  %v514_v37 = vrot.slane %v501_v60, 4  ;;  %v517_v38 = vsel %vm294_vm4, %v501_v60, %v516_v19 }
  0xd8   :  { %v404_v8 = vrot.slane %v365_v55, 4  ;;  %v391_v39 = vsel %vm294_vm4, %v390_v30, %v913_v26  ;;  %v503_v40 = vsel %vm294_vm4, %v502_v35, %v888_v3 }
  0xd9   :  { %v513_v32 = vsel %vm294_vm4, %v497_v43, %v512_v34  ;;  %v510_v45 = vrot.slane %v497_v43, 4  ;;  %v515_v49 = vsel %vm294_vm4, %v514_v37, %v895_v33 }
  0xda   :  { %v405_v27 = vsel %vm294_vm4, %v389_v10, %v404_v8 }
  0xdb   :  { %v511_v19 = vsel %vm294_vm4, %v510_v45, %v906_v18 }
  0xdd   :  { %519 = vrot.lane.b32.xlu0 %v393_v7, %s689_s15 }
  0xde   :  { %531 = vrot.lane.b32.xlu1 %v399_v31, %s690_s16 }
  0xdf   :  { %555 = vrot.lane.b32.xlu2 %v509_v12, %s684_s13 }
  0xe5   :  { %539 = vrot.lane.b32.xlu0 %v403_v51, %s685_s0 }
  0xe6   :  { %547 = vrot.lane.b32.xlu1 %v505_v36, %s689_s15 }
  0xe7   :  { %535 = vrot.lane.b32.xlu2 %v401_v22, %s691_s17 }
  0xed   :  { %563 = vrot.lane.b32.xlu0 %v513_v32, %s691_s17 }
  0xee   :  { %567 = vrot.lane.b32.xlu1 %v515_v49, %s685_s0 }
  0xef   :  { %559 = vrot.lane.b32.xlu2 %v511_v19, %s690_s16 }
  0xf5   :  { %571 = vrot.lane.b32.xlu0 %v517_v38, %s692_s18 }
  0xf7   :  { %543 = vrot.lane.b32.xlu2 %v405_v27, %s692_s18 }
 0x131   :  { %v524_v3 = vpop.permute.xlu2 %523 }
 0x139   :  { %v556_v33 = vpop.permute.xlu2 %555 }
 0x141   :  { %v536_v18 = vpop.permute.xlu2 %535 }
 0x147   :  { %v528_v26 = vpop.permute.xlu0 %527 }
 0x148   :  { %v552_v34 = vpop.permute.xlu1 %551  ;;  %v578_v16 = vsel %vm259_vm2, %v524_v3, %v528_v26 }
 0x149   :  { %v560_v42 = vpop.permute.xlu2 %559  ;;  %v588_v62 = vsel %vm259_vm2, %v552_v34, %v556_v33 }
 0x14a   :  { %v589_v23 = vsel %vm579_vm8, %v588_v62, %v560_v42 }
 0x14f   :  { %v520_v44 = vpop.permute.xlu0 %519 }
 0x150   :  { %v575_v46 = vsel %vm574_vm5, %v391_v39, %v520_v44  ;;  %v532_v47 = vpop.permute.xlu1 %531 }
 0x151   :  { %v577_v48 = vsel %vm576_vm6, %v575_v46, %v524_v3  ;;  %v580_v52 = vsel %vm579_vm8, %v578_v16, %v532_v47  ;;  %v544_v55 = vpop.permute.xlu2 %543 }
 0x152   :  { %593 = vst [vmem:[#allocation5] sm:$0xff] %v577_v48  ;;  %v582_v14 = vsel %vm581_vm7, %v580_v52, %v536_v18 }
 0x153   :  { %594 = vst [vmem:[#allocation5 + $0x8] sm:$0xff] %v582_v14 }
 0x157   :  { %v540_v53 = vpop.permute.xlu0 %539 }
 0x158   :  { %v583_v58 = vsel %vm276_vm3, %v536_v18, %v540_v53  ;;  %v548_v59 = vpop.permute.xlu1 %547 }
 0x159   :  { %v585_v54 = vsel %vm584_vm9, %v583_v58, %v544_v55  ;;  %v586_v50 = vsel %vm574_vm5, %v503_v40, %v548_v59 }
 0x15a   :  { %595 = vst [vmem:[#allocation5 + $0x10] sm:$0xff] %v585_v54  ;;  %v587_v6 = vsel %vm576_vm6, %v586_v50, %v552_v34 }
 0x15b   :  { %596 = vst [vmem:[#allocation5 + $0x18] sm:$0xff] %v587_v6 }
 0x15f   :  { %v564_v15 = vpop.permute.xlu0 %563 }
 0x160   :  { %v590_v60 = vsel %vm581_vm7, %v589_v23, %v564_v15  ;;  %v568_v61 = vpop.permute.xlu1 %567 }
 0x161   :  { %597 = vst [vmem:[#allocation5 + $0x20] sm:$0xff] %v590_v60  ;;  %v591_v63 = vsel %vm276_vm3, %v564_v15, %v568_v61 }
 0x167   :  { %v572_v10 = vpop.permute.xlu0 %571 }
 0x168   :  { %v592_v1 = vsel %vm584_vm9, %v591_v63, %v572_v10 }
 0x169   :  { %598 = vst [vmem:[#allocation5 + $0x28] sm:$0xff] %v592_v1 }
 0x16a   :  { %609 = dma.vmem_to_hbm [thread:$0]  %s605_s20, 768, %s607_s23, [#allocation4]  }
 0x16b   :  { %679 = dma.done.wait [#allocation4], 768  }
 0x16c   :  { %680 = vsyncadd [#allocation4], 4294966528 }
 0x16d   :  { %614 = vsyncpa [#allocation3], 1 }
 0x16e   :  { %615 = vsyncpa [#allocation4], 1 }

// kernel: tpu_custom_call.1
= control target key start
LH: loop header
LB: loop body
LE: loop exit
PB: predicated region body
PF: predicated region fallthrough
CT: control target
= control target key end

     0   :  { %6 = vsyncpa [#allocation3], 0  ;;  %s491_s0 = inlined_call_operand.hbm [shape: f32[8,16,16], index: 0, kind: input, shape index: {}]   ;;  %s492_s1 = inlined_call_operand.hbm [shape: f32[8,16,48], index: 1, kind: output, shape index: {}]  }
   0x1   :  { %7 = vsyncpa [#allocation4], 0  ;;  %s12_s8 = sshll.u32 %s491_s0, 4  ;;  %s350_s9 = smov [#allocation2]   ;;  %s13_s8 = int_to_ptr.hbm [resolvable:$true] %s12_s8 }
   0x2   :  { %s14_s10 = sshll.u32 %s350_s9, 4  ;;  %s351_s11 = smov 128   ;;  %s15_s10 = int_to_ptr.vmem [resolvable:$true] %s14_s10 }
   0x3   :  { %s352_s12 = smov 8  }
   0x4   :  { %20 = dma.hbm_to_vmem [thread:$0]  %s13_s8, 2048, %s15_s10, [#allocation3], %s351_s11, %s351_s11, %s352_s12  }
   0x5   :  { %346 = dma.done.wait [#allocation3], 2048  }
   0x6   :  { %347 = vsyncadd [#allocation3], 4294965248  ;;  %v70_v0 = vld [vmem:[#allocation2 + $0x10] sm:$0xff]  ;;  %v68_v1 = vld [vmem:[#allocation2] sm:$0xff]  ;;  %s353_s13 = smov 16   ;;  %s354_s0 = smov 32  }
   0x7   :  { %104 = vrot.lane.b32.xlu1 %v70_v0, %s353_s13  ;;  %100 = vrot.lane.b32.xlu0 %v68_v1, %s353_s13  ;;  %v72_v2 = vld [vmem:[#allocation2 + $0x20] sm:$0xff]  ;;  %v71_v3 = vld [vmem:[#allocation2 + $0x18] sm:$0xff]  ;;  %v69_v4 = vld [vmem:[#allocation2 + $0x8] sm:$0xff]  ;;  %vm25_vm0 = vcmask 122880   ;;  %vm50_vm1 = vcmask 130048   ;;  %v355_v21 = vmov 0.0  }
   0x8   :  { %108 = vrot.lane.b32.xlu2 %v72_v2, %s353_s13  ;;  %v73_v5 = vld [vmem:[#allocation2 + $0x28] sm:$0xff]  ;;  %v75_v6 = vld [vmem:[#allocation2 + $0x38] sm:$0xff]  ;;  %v74_v7 = vld [vmem:[#allocation2 + $0x30] sm:$0xff]  ;;  %27 = vst.msk [vmem:[#allocation5 + $0x10] sm:$0x1] %vm25_vm0, %v355_v21  ;;  %vm52_vm2 = vcmask 129024  }
   0x9   :  { %v76_v8 = vld [vmem:[#allocation2 + $0x40] sm:$0xff]  ;;  %v78_v9 = vld [vmem:[#allocation2 + $0x50] sm:$0xff]  ;;  %v77_v10 = vld [vmem:[#allocation2 + $0x48] sm:$0xff]  ;;  %54 = vst.msk [vmem:[#allocation5 + $0x11] sm:$0xff] %vm50_vm1, %v70_v0  ;;  %vm148_vm3 = vcmask 261248   ;;  %vm263_vm4 = vcmask 385280  }
   0xa   :  { %v79_v11 = vld [vmem:[#allocation2 + $0x58] sm:$0xff]  ;;  %v81_v12 = vld [vmem:[#allocation2 + $0x68] sm:$0xff]  ;;  %v80_v13 = vld [vmem:[#allocation2 + $0x60] sm:$0xff]  ;;  %26 = vst.msk [vmem:[#allocation5] sm:$0x1] %vm25_vm0, %v355_v21  ;;  %vm247_vm5 = vcmask 391424  }
   0xb   :  { %v82_v14 = vld [vmem:[#allocation2 + $0x70] sm:$0xff]  ;;  %v165_v15 = vld [vmem:[#allocation2 + $0x1] sm:$0xff]  ;;  %v83_v16 = vld [vmem:[#allocation2 + $0x78] sm:$0xff]  ;;  %28 = vst.msk [vmem:[#allocation5 + $0x20] sm:$0x1] %vm25_vm0, %v355_v21  ;;  %vm245_vm6 = vcmask 392448  }
   0xc   :  { %v166_v17 = vld [vmem:[#allocation2 + $0x9] sm:$0x7f]  ;;  %v168_v18 = vld [vmem:[#allocation2 + $0x19] sm:$0x7f]  ;;  %v167_v19 = vld [vmem:[#allocation2 + $0x11] sm:$0xff]  ;;  %51 = vst.msk [vmem:[#allocation5 + $0x1] sm:$0xff] %vm50_vm1, %v68_v1 }
   0xd   :  { %v169_v20 = vld [vmem:[#allocation2 + $0x21] sm:$0xff]  ;;  %v171_v22 = vld [vmem:[#allocation2 + $0x31] sm:$0xff]  ;;  %v170_v23 = vld [vmem:[#allocation2 + $0x29] sm:$0x7f]  ;;  %29 = vst.msk [vmem:[#allocation5 + $0x30] sm:$0x1] %vm25_vm0, %v355_v21 }
   0xe   :  { %v172_v24 = vld [vmem:[#allocation2 + $0x39] sm:$0x7f]  ;;  %30 = vst.msk [vmem:[#allocation5 + $0x40] sm:$0x1] %vm25_vm0, %v355_v21  ;;  %v174_v25 = vld [vmem:[#allocation2 + $0x49] sm:$0x7f] }
   0xf   :  { %106 = vrot.lane.b32.xlu1 %v71_v3, %s353_s13  ;;  %102 = vrot.lane.b32.xlu0 %v69_v4, %s353_s13  ;;  %31 = vst.msk [vmem:[#allocation5 + $0x50] sm:$0x1] %vm25_vm0, %v355_v21  ;;  %v173_v26 = vld [vmem:[#allocation2 + $0x41] sm:$0xff]  ;;  %v175_v27 = vld [vmem:[#allocation2 + $0x51] sm:$0xff]  ;;  %v176_v29 = vld [vmem:[#allocation2 + $0x59] sm:$0x7f] }
  0x10   :  { %110 = vrot.lane.b32.xlu2 %v73_v5, %s353_s13  ;;  %32 = vst.msk [vmem:[#allocation5 + $0x60] sm:$0x1] %vm25_vm0, %v355_v21  ;;  %v177_v28 = vld [vmem:[#allocation2 + $0x61] sm:$0xff]  ;;  %v178_v30 = vld [vmem:[#allocation2 + $0x69] sm:$0x7f]  ;;  %v179_v32 = vld [vmem:[#allocation2 + $0x71] sm:$0xff] }
  0x11   :  { %33 = vst.msk [vmem:[#allocation5 + $0x70] sm:$0x1] %vm25_vm0, %v355_v21  ;;  %v180_v31 = vld [vmem:[#allocation2 + $0x79] sm:$0x7f]  ;;  %v35_v34 = vld [vmem:[#allocation2 + $0x8] sm:$0x7f] }
  0x12   :  { %56 = vst.msk [vmem:[#allocation5 + $0x21] sm:$0xff] %vm50_vm1, %v72_v2  ;;  %v37_v33 = vld [vmem:[#allocation2 + $0x18] sm:$0x7f]  ;;  %v39_v36 = vld [vmem:[#allocation2 + $0x28] sm:$0x7f]  ;;  %s356_s14 = smov [#allocation5]  }
  0x13   :  { %58 = vst.msk [vmem:[#allocation5 + $0x31] sm:$0xff] %vm50_vm1, %v74_v7  ;;  %v41_v37 = vld [vmem:[#allocation2 + $0x38] sm:$0x7f]  ;;  %v43_v39 = vld [vmem:[#allocation2 + $0x48] sm:$0x7f]  ;;  %s276_s15 = sshll.u32 %s356_s14, 4  ;;  %s277_s15 = int_to_ptr.vmem [resolvable:$true] %s276_s15 }
  0x14   :  { %60 = vst.msk [vmem:[#allocation5 + $0x41] sm:$0xff] %vm50_vm1, %v76_v8  ;;  %v45_v41 = vld [vmem:[#allocation2 + $0x58] sm:$0x7f]  ;;  %v47_v45 = vld [vmem:[#allocation2 + $0x68] sm:$0x7f]  ;;  %s278_s18 = sshll.u32 %s492_s1, 4  ;;  %s279_s18 = int_to_ptr.hbm [resolvable:$true] %s278_s18 }
  0x15   :  { %62 = vst.msk [vmem:[#allocation5 + $0x51] sm:$0xff] %vm50_vm1, %v78_v9  ;;  %v49_v49 = vld [vmem:[#allocation2 + $0x78] sm:$0x7f] }
  0x16   :  { %64 = vst.msk [vmem:[#allocation5 + $0x61] sm:$0xff] %vm50_vm1, %v80_v13 }
  0x17   :  { %114 = vrot.lane.b32.xlu1 %v75_v6, %s353_s13  ;;  %112 = vrot.lane.b32.xlu0 %v74_v7, %s353_s13  ;;  %66 = vst.msk [vmem:[#allocation5 + $0x71] sm:$0xff] %vm50_vm1, %v82_v14 }
  0x18   :  { %116 = vrot.lane.b32.xlu2 %v76_v8, %s353_s13  ;;  %55 = vst.msk [vmem:[#allocation5 + $0x19] sm:$0x7f] %vm52_vm2, %v37_v33 }
  0x19   :  { %53 = vst.msk [vmem:[#allocation5 + $0x9] sm:$0x7f] %vm52_vm2, %v35_v34 }
  0x1a   :  { %57 = vst.msk [vmem:[#allocation5 + $0x29] sm:$0x7f] %vm52_vm2, %v39_v36 }
  0x1b   :  { %59 = vst.msk [vmem:[#allocation5 + $0x39] sm:$0x7f] %vm52_vm2, %v41_v37 }
  0x1c   :  { %61 = vst.msk [vmem:[#allocation5 + $0x49] sm:$0x7f] %vm52_vm2, %v43_v39 }
  0x1d   :  { %63 = vst.msk [vmem:[#allocation5 + $0x59] sm:$0x7f] %vm52_vm2, %v45_v41 }
  0x1e   :  { %65 = vst.msk [vmem:[#allocation5 + $0x69] sm:$0x7f] %vm52_vm2, %v47_v45 }
  0x1f   :  { %120 = vrot.lane.b32.xlu1 %v78_v9, %s353_s13  ;;  %118 = vrot.lane.b32.xlu0 %v77_v10, %s353_s13  ;;  %67 = vst.msk [vmem:[#allocation5 + $0x79] sm:$0x7f] %vm52_vm2, %v49_v49 }
  0x20   :  { %122 = vrot.lane.b32.xlu2 %v79_v11, %s353_s13 }
  0x27   :  { %126 = vrot.lane.b32.xlu1 %v81_v12, %s353_s13  ;;  %124 = vrot.lane.b32.xlu0 %v80_v13, %s353_s13 }
  0x28   :  { %128 = vrot.lane.b32.xlu2 %v82_v14, %s353_s13 }
  0x2f   :  { %197 = vrot.lane.b32.xlu1 %v165_v15, %s354_s0  ;;  %130 = vrot.lane.b32.xlu0 %v83_v16, %s353_s13 }
  0x30   :  { %199 = vrot.lane.b32.xlu2 %v166_v17, %s354_s0 }
  0x37   :  { %203 = vrot.lane.b32.xlu1 %v168_v18, %s354_s0  ;;  %201 = vrot.lane.b32.xlu0 %v167_v19, %s354_s0 }
  0x38   :  { %205 = vrot.lane.b32.xlu2 %v169_v20, %s354_s0 }
  0x3f   :  { %209 = vrot.lane.b32.xlu1 %v171_v22, %s354_s0  ;;  %207 = vrot.lane.b32.xlu0 %v170_v23, %s354_s0 }
  0x40   :  { %211 = vrot.lane.b32.xlu2 %v172_v24, %s354_s0 }
  0x47   :  { %215 = vrot.lane.b32.xlu1 %v174_v25, %s354_s0  ;;  %213 = vrot.lane.b32.xlu0 %v173_v26, %s354_s0 }
  0x48   :  { %217 = vrot.lane.b32.xlu2 %v175_v27, %s354_s0 }
  0x4f   :  { %221 = vrot.lane.b32.xlu1 %v177_v28, %s354_s0  ;;  %219 = vrot.lane.b32.xlu0 %v176_v29, %s354_s0 }
  0x50   :  { %223 = vrot.lane.b32.xlu2 %v178_v30, %s354_s0 }
  0x57   :  { %227 = vrot.lane.b32.xlu1 %v180_v31, %s354_s0  ;;  %225 = vrot.lane.b32.xlu0 %v179_v32, %s354_s0 }
  0x62   :  { %v109_v35 = vpop.permute.xlu2 %108 }
  0x63   :  { %153 = vst.msk [vmem:[#allocation5 + $0x20] sm:$0xff] %vm148_vm3, %v109_v35 }
  0x6a   :  { %v111_v38 = vpop.permute.xlu2 %110 }
  0x6b   :  { %154 = vst.msk [vmem:[#allocation5 + $0x28] sm:$0xff] %vm148_vm3, %v111_v38 }
  0x6c   :  { %266 = vst.msk [vmem:[#allocation5 + $0x2f] sm:$0x1] %vm263_vm4, %v355_v21 }
  0x72   :  { %v117_v40 = vpop.permute.xlu2 %116 }
  0x73   :  { %157 = vst.msk [vmem:[#allocation5 + $0x40] sm:$0xff] %vm148_vm3, %v117_v40 }
  0x79   :  { %v105_v42 = vpop.permute.xlu1 %104  ;;  %v101_v43 = vpop.permute.xlu0 %100 }
  0x7a   :  { %151 = vst.msk [vmem:[#allocation5 + $0x10] sm:$0xff] %vm148_vm3, %v105_v42  ;;  %v123_v44 = vpop.permute.xlu2 %122 }
  0x7b   :  { %149 = vst.msk [vmem:[#allocation5] sm:$0xff] %vm148_vm3, %v101_v43 }
  0x7c   :  { %160 = vst.msk [vmem:[#allocation5 + $0x58] sm:$0xff] %vm148_vm3, %v123_v44 }
  0x7d   :  { %269 = vst.msk [vmem:[#allocation5 + $0x5f] sm:$0x1] %vm263_vm4, %v355_v21 }
  0x81   :  { %v107_v46 = vpop.permute.xlu1 %106  ;;  %v103_v47 = vpop.permute.xlu0 %102 }
  0x82   :  { %152 = vst.msk [vmem:[#allocation5 + $0x18] sm:$0xff] %vm148_vm3, %v107_v46  ;;  %v129_v48 = vpop.permute.xlu2 %128 }
  0x83   :  { %265 = vst.msk [vmem:[#allocation5 + $0x1f] sm:$0x1] %vm263_vm4, %v355_v21 }
  0x84   :  { %150 = vst.msk [vmem:[#allocation5 + $0x8] sm:$0xff] %vm148_vm3, %v103_v47 }
  0x85   :  { %264 = vst.msk [vmem:[#allocation5 + $0xf] sm:$0x1] %vm263_vm4, %v355_v21 }
  0x86   :  { %163 = vst.msk [vmem:[#allocation5 + $0x70] sm:$0xff] %vm148_vm3, %v129_v48 }
  0x89   :  { %v115_v50 = vpop.permute.xlu1 %114  ;;  %v113_v51 = vpop.permute.xlu0 %112 }
  0x8a   :  { %156 = vst.msk [vmem:[#allocation5 + $0x38] sm:$0xff] %vm148_vm3, %v115_v50  ;;  %v200_v52 = vpop.permute.xlu2 %199 }
  0x8b   :  { %267 = vst.msk [vmem:[#allocation5 + $0x3f] sm:$0x1] %vm263_vm4, %v355_v21 }
  0x8c   :  { %155 = vst.msk [vmem:[#allocation5 + $0x30] sm:$0xff] %vm148_vm3, %v113_v51 }
  0x8d   :  { %248 = vst.msk [vmem:[#allocation5 + $0x8] sm:$0x7f] %vm247_vm5, %v200_v52 }
  0x91   :  { %v121_v53 = vpop.permute.xlu1 %120  ;;  %v119_v54 = vpop.permute.xlu0 %118 }
  0x92   :  { %159 = vst.msk [vmem:[#allocation5 + $0x50] sm:$0xff] %vm148_vm3, %v121_v53  ;;  %v206_v55 = vpop.permute.xlu2 %205 }
  0x93   :  { %158 = vst.msk [vmem:[#allocation5 + $0x48] sm:$0xff] %vm148_vm3, %v119_v54 }
  0x94   :  { %268 = vst.msk [vmem:[#allocation5 + $0x4f] sm:$0x1] %vm263_vm4, %v355_v21 }
  0x95   :  { %251 = vst.msk [vmem:[#allocation5 + $0x20] sm:$0xff] %vm245_vm6, %v206_v55 }
  0x99   :  { %v127_v56 = vpop.permute.xlu1 %126  ;;  %v125_v57 = vpop.permute.xlu0 %124 }
  0x9a   :  { %162 = vst.msk [vmem:[#allocation5 + $0x68] sm:$0xff] %vm148_vm3, %v127_v56  ;;  %v212_v58 = vpop.permute.xlu2 %211 }
  0x9b   :  { %270 = vst.msk [vmem:[#allocation5 + $0x6f] sm:$0x1] %vm263_vm4, %v355_v21 }
  0x9c   :  { %161 = vst.msk [vmem:[#allocation5 + $0x60] sm:$0xff] %vm148_vm3, %v125_v57 }
  0x9d   :  { %254 = vst.msk [vmem:[#allocation5 + $0x38] sm:$0x7f] %vm247_vm5, %v212_v58 }
  0xa1   :  { %v198_v59 = vpop.permute.xlu1 %197  ;;  %v131_v60 = vpop.permute.xlu0 %130 }
  0xa2   :  { %246 = vst.msk [vmem:[#allocation5] sm:$0xff] %vm245_vm6, %v198_v59  ;;  %v218_v61 = vpop.permute.xlu2 %217 }
  0xa3   :  { %164 = vst.msk [vmem:[#allocation5 + $0x78] sm:$0xff] %vm148_vm3, %v131_v60 }
  0xa4   :  { %271 = vst.msk [vmem:[#allocation5 + $0x7f] sm:$0x1] %vm263_vm4, %v355_v21 }
  0xa5   :  { %257 = vst.msk [vmem:[#allocation5 + $0x50] sm:$0xff] %vm245_vm6, %v218_v61 }
  0xa9   :  { %v204_v62 = vpop.permute.xlu1 %203  ;;  %v202_v63 = vpop.permute.xlu0 %201 }
  0xaa   :  { %250 = vst.msk [vmem:[#allocation5 + $0x18] sm:$0x7f] %vm247_vm5, %v204_v62  ;;  %v224_v0 = vpop.permute.xlu2 %223 }
  0xab   :  { %249 = vst.msk [vmem:[#allocation5 + $0x10] sm:$0xff] %vm245_vm6, %v202_v63 }
  0xac   :  { %260 = vst.msk [vmem:[#allocation5 + $0x68] sm:$0x7f] %vm247_vm5, %v224_v0 }
  0xb1   :  { %v210_v1 = vpop.permute.xlu1 %209  ;;  %v208_v2 = vpop.permute.xlu0 %207 }
  0xb2   :  { %253 = vst.msk [vmem:[#allocation5 + $0x30] sm:$0xff] %vm245_vm6, %v210_v1 }
  0xb3   :  { %252 = vst.msk [vmem:[#allocation5 + $0x28] sm:$0x7f] %vm247_vm5, %v208_v2 }
  0xb9   :  { %v216_v3 = vpop.permute.xlu1 %215  ;;  %v214_v4 = vpop.permute.xlu0 %213 }
  0xba   :  { %256 = vst.msk [vmem:[#allocation5 + $0x48] sm:$0x7f] %vm247_vm5, %v216_v3 }
  0xbb   :  { %255 = vst.msk [vmem:[#allocation5 + $0x40] sm:$0xff] %vm245_vm6, %v214_v4 }
  0xc1   :  { %v222_v5 = vpop.permute.xlu1 %221  ;;  %v220_v6 = vpop.permute.xlu0 %219 }
  0xc2   :  { %259 = vst.msk [vmem:[#allocation5 + $0x60] sm:$0xff] %vm245_vm6, %v222_v5 }
  0xc3   :  { %258 = vst.msk [vmem:[#allocation5 + $0x58] sm:$0x7f] %vm247_vm5, %v220_v6 }
  0xc9   :  { %v228_v7 = vpop.permute.xlu1 %227  ;;  %v226_v8 = vpop.permute.xlu0 %225 }
  0xca   :  { %262 = vst.msk [vmem:[#allocation5 + $0x78] sm:$0x7f] %vm247_vm5, %v228_v7 }
  0xcb   :  { %261 = vst.msk [vmem:[#allocation5 + $0x70] sm:$0xff] %vm245_vm6, %v226_v8 }
  0xcc   :  { %284 = dma.vmem_to_hbm [thread:$0]  %s277_s15, 2048, %s279_s18, [#allocation4], %s351_s11, %s351_s11, %s352_s12  }
  0xcd   :  { %348 = dma.done.wait [#allocation4], 2048  }
  0xce   :  { %349 = vsyncadd [#allocation4], 4294965248 }
  0xcf   :  { %289 = vsyncpa [#allocation3], 1 }
  0xd0   :  { %290 = vsyncpa [#allocation4], 1 }

</bundles_post_ra>
